<compile_context>
chip_gen: v5e
topology: v5e:2x2
jax: 0.10.0
libtpu: 0.0.40
codegen_flags: <defaults>
</compile_context>

<pallas_src>
import functools

import jax
import jax.numpy as jnp
import numpy as np
from jax import lax
from jax.experimental import pallas as pl
from jax.experimental.pallas import tpu as pltpu


# ---------------------------------------------------------------------------
# kernels
# ---------------------------------------------------------------------------
def _running_max_update(acc_ref, o, *, n_pts, tile_n, tile_id, n_tiles):
    """acc <- max(acc, lane-max(o)); masks ragged lanes of the last tile."""
    rem = n_pts % tile_n          # static python int
    if rem:
        limit = jnp.where(tile_id == n_tiles - 1, rem, tile_n)
        col = lax.broadcasted_iota(jnp.int32, o.shape, 1)
        o = jnp.where(col < limit, o, -jnp.inf)
    acc_ref[...] = jnp.maximum(acc_ref[...], jnp.max(o, axis=1, keepdims=True))


def _pointnet_concat_kernel(x_ref, w1_ref, b1_ref, w12_ref, b12_ref,
                            w3_ref, b3_ref, out_ref, g_acc,
                            *, out_dim, n_pts, tile_n):
    """global_feat=False.  grid = (B, 2, n_tiles); NCW layout end-to-end.

    pass p==0 : deep branch (w12/w3, ReLU) on this x tile + running max in g_acc
    pass p==1 : pointfeat (w1) on this x tile + two slice stores of
                [broadcast(global) ; pointfeat] into the (out_dim+c_sh, tile_n)
                output block.
    """
    p = pl.program_id(1)
    t = pl.program_id(2)
    n_tiles = pl.num_programs(2)

    @pl.when((p == 0) & (t == 0))
    def _():
        g_acc[...] = jnp.full_like(g_acc, -jnp.inf)

    x = x_ref[0]                                              # (c_in, tile_n) bf16

    @pl.when(p == 0)
    def _():
        h = jnp.dot(w12_ref[...], x,
                    preferred_element_type=jnp.float32) + b12_ref[...]
        h = jnp.maximum(h, 0.0).astype(x.dtype)               # back to bf16 for MXU
        o = jnp.dot(w3_ref[...], h,
                    preferred_element_type=jnp.float32) + b3_ref[...]
        _running_max_update(g_acc, o, n_pts=n_pts, tile_n=tile_n,
                            tile_id=t, n_tiles=n_tiles)

    @pl.when(p == 1)
    def _():
        pf = jnp.dot(w1_ref[...], x,
                     preferred_element_type=jnp.float32) + b1_ref[...]
        # two aligned, lane-dense slice stores (out_dim is a multiple of 8);
        # no concatenate materialization.
        out_ref[0, :out_dim, :] = jnp.broadcast_to(
            g_acc[...], (out_dim, tile_n)).astype(out_ref.dtype)
        out_ref[0, out_dim:, :] = pf.astype(out_ref.dtype)


def _pointnet_global_kernel(x_ref, w12_ref, b12_ref, w3_ref, b3_ref,
                            g_ref, acc_ref, *, n_pts, tile_n):
    """global_feat=True.  grid = (B, n_tiles); tiny (B, out_dim, 1) output."""
    t = pl.program_id(1)
    n_tiles = pl.num_programs(1)

    @pl.when(t == 0)
    def _():
        acc_ref[...] = jnp.full_like(acc_ref, -jnp.inf)

    x = x_ref[0]                                              # (c_in, tile_n) bf16
    h = jnp.dot(w12_ref[...], x,
                preferred_element_type=jnp.float32) + b12_ref[...]
    h = jnp.maximum(h, 0.0).astype(x.dtype)
    o = jnp.dot(w3_ref[...], h,
                preferred_element_type=jnp.float32) + b3_ref[...]
    _running_max_update(acc_ref, o, n_pts=n_pts, tile_n=tile_n,
                        tile_id=t, n_tiles=n_tiles)

    @pl.when(t == n_tiles - 1)
    def _():
        g_ref[0] = acc_ref[...]


# ---------------------------------------------------------------------------
# wrappers
# ---------------------------------------------------------------------------
def fold_conv_bn(w, b, gamma, beta, mean, var, eps=1e-5):
    """Fold eval-mode BatchNorm1d into a 1x1 Conv1d (kernel dim squeezed)."""
    scale = gamma / jnp.sqrt(var + eps)
    w_f = (w * scale[:, None]).astype(jnp.float32)
    b_f = ((b - mean) * scale + beta).astype(jnp.float32)
    return w_f, b_f[:, None]


def _pick_tile_n(n_pts, per_col_bytes, *, cap=2048, budget=28 << 20):
    """Largest multiple-of-128 point tile within the cap and VMEM byte budget."""
    if n_pts <= 128:
        return n_pts                      # full extent (allowed by (8,128) rule)
    t = min(cap, max(128, budget // max(per_col_bytes, 1)), n_pts)
    return max(128, (t // 128) * 128)


def pointnet_feat(x, params, *, out_dim, global_feat=False,
                  compute_dtype=jnp.bfloat16, max_tile_n=2048):
    """x: (B, input_dim, N) float32 (PyTorch NCW layout, kept end-to-end)."""
    B, c_in, n_pts = x.shape
    w1, b1 = params["w1"], params["b1"]          # (C_sh,  C_in), (C_sh, 1)
    w2, b2 = params["w2"], params["b2"]          # (C_mid, C_sh), (C_mid, 1)
    w3, b3 = params["w3"], params["b3"]          # (C_out, C_mid), (C_out, 1)
    c_sh, c_mid = w1.shape[0], w2.shape[0]

    # fold layer-1 into layer-2 (exact: no nonlinearity between them here)
    w12 = w2 @ w1                                 # (C_mid, C_in)
    b12 = (w2 @ b1 + b2).astype(jnp.float32)      # (C_mid, 1)

    itemsize = jnp.dtype(compute_dtype).itemsize
    x_c = x.astype(compute_dtype)
    w1_c = w1.astype(compute_dtype)
    w12_c = w12.astype(compute_dtype)
    w3_c = w3.astype(compute_dtype)
    b1_f = b1.astype(jnp.float32)
    b3_f = b3.astype(jnp.float32)

    w_bytes = (2 * itemsize * (w1_c.size + w12_c.size + w3_c.size)
               + 2 * 4 * (c_sh + c_mid + out_dim))

    if global_feat:
        # per-point-column VMEM cost: x (2 bufs) + o/h intermediates + mask room
        per_col = (2 * c_in * itemsize
                   + 4 * out_dim + 4 * c_mid + itemsize * c_mid
                   + 4 * out_dim)
        tile_n = _pick_tile_n(n_pts, per_col, cap=max_tile_n)
        n_tiles = pl.cdiv(n_pts, tile_n)
        vmem_limit = int(min(max(1.5 * (per_col * tile_n + w_bytes) + (2 << 20),
                                 8 << 20), 64 << 20))
        kernel = functools.partial(_pointnet_global_kernel,
                                   n_pts=n_pts, tile_n=tile_n)
        g = pl.pallas_call(
            kernel,
            out_shape=jax.ShapeDtypeStruct((B, out_dim, 1), jnp.float32),
            grid_spec=pltpu.PrefetchScalarGridSpec(
                num_scalar_prefetch=0,
                grid=(B, n_tiles),
                in_specs=[
                    pl.BlockSpec((1, c_in, tile_n), lambda b, t: (b, 0, t)),
                    pl.BlockSpec((c_mid, c_in), lambda b, t: (0, 0)),
                    pl.BlockSpec((c_mid, 1), lambda b, t: (0, 0)),
                    pl.BlockSpec((out_dim, c_mid), lambda b, t: (0, 0)),
                    pl.BlockSpec((out_dim, 1), lambda b, t: (0, 0)),
                ],
                out_specs=pl.BlockSpec((1, out_dim, 1), lambda b, t: (b, 0, 0)),
                scratch_shapes=[pltpu.VMEM((out_dim, 1), jnp.float32)],
            ),
            compiler_params=pltpu.CompilerParams(
                dimension_semantics=("parallel", "arbitrary"),
                vmem_limit_bytes=vmem_limit),
        )(x_c, w12_c, b12, w3_c, b3_f)
        return g[:, :, 0], None, None             # (B, out_dim)

    # --- concat path: two-pass tiled grid -----------------------------------
    per_col = (2 * c_in * itemsize                      # x block, double-buffered
               + 2 * 4 * (out_dim + c_sh)               # out block, double-buffered
               + 4 * (2 * out_dim + c_mid + c_sh)       # o, broadcast, h, pf (f32)
               + itemsize * c_mid)                      # h cast to bf16
    tile_n = _pick_tile_n(n_pts, per_col, cap=max_tile_n)
    n_tiles = pl.cdiv(n_pts, tile_n)
    vmem_limit = int(min(max(1.5 * (per_col * tile_n + w_bytes) + (2 << 20),
                             8 << 20), 64 << 20))
    kernel = functools.partial(_pointnet_concat_kernel,
                               out_dim=out_dim, n_pts=n_pts, tile_n=tile_n)
    out = pl.pallas_call(
        kernel,
        out_shape=jax.ShapeDtypeStruct((B, out_dim + c_sh, n_pts), jnp.float32),
        grid_spec=pltpu.PrefetchScalarGridSpec(
            num_scalar_prefetch=0,
            grid=(B, 2, n_tiles),
            in_specs=[
                pl.BlockSpec((1, c_in, tile_n), lambda b, p, t: (b, 0, t)),
                pl.BlockSpec((c_sh, c_in), lambda b, p, t: (0, 0)),
                pl.BlockSpec((c_sh, 1), lambda b, p, t: (0, 0)),
                pl.BlockSpec((c_mid, c_in), lambda b, p, t: (0, 0)),
                pl.BlockSpec((c_mid, 1), lambda b, p, t: (0, 0)),
                pl.BlockSpec((out_dim, c_mid), lambda b, p, t: (0, 0)),
                pl.BlockSpec((out_dim, 1), lambda b, p, t: (0, 0)),
            ],
            # pass 0 pins the output to block (b, 0, 0): never written there,
            # never flushed; pass 1 walks the real tiles so every output block
            # is DMA'd back to HBM exactly once with final data.
            out_specs=pl.BlockSpec((1, out_dim + c_sh, tile_n),
                                   lambda b, p, t: (b, 0, t * p)),
            scratch_shapes=[pltpu.VMEM((out_dim, 1), jnp.float32)],
        ),
        compiler_params=pltpu.CompilerParams(
            dimension_semantics=("parallel", "arbitrary", "arbitrary"),
            vmem_limit_bytes=vmem_limit),
    )(x_c, w1_c, b1_f, w12_c, b12, w3_c, b3_f)
    # already in PyTorch layout: (B, out_dim + shallow_dim, N)
    return out, None, None


# ---------------------------------------------------------------------------
# pure-JAX reference (PyTorch forward, BN folded, eval mode)
# ---------------------------------------------------------------------------
def reference_forward(x, params, *, out_dim, global_feat=False,
                      compute_dtype=None):
    """compute_dtype=None -> exact f32 math; bf16 -> mirrors the kernel's MXU
    input rounding (f32 accumulation) for a tight comparison."""
    f32 = jnp.float32
    rnd = ((lambda a: a.astype(compute_dtype).astype(f32)) if compute_dtype
           else (lambda a: a.astype(f32)))
    mm = functools.partial(jnp.einsum, precision="highest")

    w1, b1 = params["w1"], params["b1"]
    w2, b2 = params["w2"], params["b2"]
    w3, b3 = params["w3"], params["b3"]
    w12 = w2 @ w1
    b12 = (w2 @ b1 + b2).astype(f32)

    xr = rnd(x)
    pf = mm('oi,bin->bon', rnd(w1), xr) + b1.astype(f32)[None]
    h = jnp.maximum(mm('oi,bin->bon', rnd(w12), xr) + b12[None], 0.0)
    h = rnd(h)
    o = mm('oi,bin->bon', rnd(w3), h) + b3.astype(f32)[None]
    g = jnp.max(o, axis=2)                                     # (B, out_dim)
    if global_feat:
        return g
    n_pts = x.shape[2]
    g_rep = jnp.broadcast_to(g[:, :, None], (x.shape[0], out_dim, n_pts))
    return jnp.concatenate([g_rep, pf], axis=1)                # (B, out+sh, N)


# ---------------------------------------------------------------------------
if __name__ == "__main__":
    input_dim, shallow_dim, mid_dim, out_dim = 4, 16, 32, 64
    B, n_pts = 2, 256

    key = jax.random.PRNGKey(0)
    ks = jax.random.split(key, 8)

    # Conv1d weights (Cout, Cin) with the kernel-size-1 dim squeezed, + biases.
    cw1 = 0.1 * jax.random.normal(ks[0], (shallow_dim, input_dim), jnp.float32)
    cb1 = 0.1 * jax.random.normal(ks[1], (shallow_dim,), jnp.float32)
    cw2 = 0.1 * jax.random.normal(ks[2], (mid_dim, shallow_dim), jnp.float32)
    cb2 = 0.1 * jax.random.normal(ks[3], (mid_dim,), jnp.float32)
    cw3 = 0.1 * jax.random.normal(ks[4], (out_dim, mid_dim), jnp.float32)
    cb3 = 0.1 * jax.random.normal(ks[5], (out_dim,), jnp.float32)

    def bn_defaults(c):
        return (jnp.ones((c,), jnp.float32), jnp.zeros((c,), jnp.float32),
                jnp.zeros((c,), jnp.float32), jnp.ones((c,), jnp.float32))

    w1, b1 = fold_conv_bn(cw1, cb1, *bn_defaults(shallow_dim))
    w2, b2 = fold_conv_bn(cw2, cb2, *bn_defaults(mid_dim))
    w3, b3 = fold_conv_bn(cw3, cb3, *bn_defaults(out_dim))
    params = dict(w1=w1, b1=b1, w2=w2, b2=b2, w3=w3, b3=b3)

    # input in PyTorch NCW layout: (B, input_dim, n_pts)
    x = jax.random.normal(ks[6], (B, input_dim, n_pts), jnp.float32)

    ref_f32 = reference_forward(x, params, out_dim=out_dim, global_feat=False)
    ref_bf16 = reference_forward(x, params, out_dim=out_dim, global_feat=False,
                                 compute_dtype=jnp.bfloat16)
    ref_g_f32 = reference_forward(x, params, out_dim=out_dim, global_feat=True)
    ref_g_bf16 = reference_forward(x, params, out_dim=out_dim, global_feat=True,
                                   compute_dtype=jnp.bfloat16)

    # --- concat path, forced multi-tile (2 point tiles, two-pass grid) ---
    out, trans, trans_feat = pointnet_feat(
        x, params, out_dim=out_dim, global_feat=False, max_tile_n=128)
    out = jax.block_until_ready(out)
    assert out.shape == (B, out_dim + shallow_dim, n_pts), out.shape
    np.testing.assert_allclose(np.asarray(out), np.asarray(ref_bf16),
                               rtol=5e-4, atol=5e-4)
    np.testing.assert_allclose(np.asarray(out), np.asarray(ref_f32),
                               rtol=3e-2, atol=3e-2)

    # --- concat path, default tile selection (single tile) ---
    out2, _, _ = pointnet_feat(x, params, out_dim=out_dim, global_feat=False)
    out2 = jax.block_until_ready(out2)
    np.testing.assert_allclose(np.asarray(out2), np.asarray(ref_bf16),
                               rtol=5e-4, atol=5e-4)

    # --- global_feat=True path (tiny-output kernel, tiled point axis) ---
    g, _, _ = pointnet_feat(x, params, out_dim=out_dim, global_feat=True,
                            max_tile_n=128)
    g = jax.block_until_ready(g)
    assert g.shape == (B, out_dim), g.shape
    np.testing.assert_allclose(np.asarray(g), np.asarray(ref_g_bf16),
                               rtol=5e-4, atol=5e-4)
    np.testing.assert_allclose(np.asarray(g), np.asarray(ref_g_f32),
                               rtol=3e-2, atol=3e-2)

    print("KERNEL_OK")
</pallas_src>

<mosaic_0001>
module attributes {stable_mosaic.version = 11 : i64} {
  func.func @_pointnet_concat_kernel(%arg0: i32, %arg1: i32, %arg2: i32, %arg3: memref<1x4x128xbf16, #tpu.memory_space<vmem>>, %arg4: memref<16x4xbf16, #tpu.memory_space<vmem>>, %arg5: memref<16x1xf32, #tpu.memory_space<vmem>>, %arg6: memref<32x4xbf16, #tpu.memory_space<vmem>>, %arg7: memref<32x1xf32, #tpu.memory_space<vmem>>, %arg8: memref<64x32xbf16, #tpu.memory_space<vmem>>, %arg9: memref<64x1xf32, #tpu.memory_space<vmem>>, %arg10: memref<1x80x128xf32, #tpu.memory_space<vmem>>, %arg11: memref<64x1xf32, #tpu.memory_space<vmem>>) attributes {dimension_semantics = [#tpu.dimension_semantics<parallel>, #tpu.dimension_semantics<arbitrary>, #tpu.dimension_semantics<arbitrary>], iteration_bounds = array<i64: 2, 2, 2>, scalar_prefetch = 0 : i64, scratch_operands = 1 : i64, tpu.core_type = #tpu.core_type<tc>, window_params = [{transform_indices = @transform_0, window_bounds = array<i64: 1, 4, 128>}, {pipeline_mode = #tpu.pipeline_mode<synchronous>, transform_indices = @transform_1, window_bounds = array<i64: 16, 4>}, {pipeline_mode = #tpu.pipeline_mode<synchronous>, transform_indices = @transform_2, window_bounds = array<i64: 16, 1>}, {pipeline_mode = #tpu.pipeline_mode<synchronous>, transform_indices = @transform_3, window_bounds = array<i64: 32, 4>}, {pipeline_mode = #tpu.pipeline_mode<synchronous>, transform_indices = @transform_4, window_bounds = array<i64: 32, 1>}, {pipeline_mode = #tpu.pipeline_mode<synchronous>, transform_indices = @transform_5, window_bounds = array<i64: 64, 32>}, {pipeline_mode = #tpu.pipeline_mode<synchronous>, transform_indices = @transform_6, window_bounds = array<i64: 64, 1>}, {transform_indices = @transform_7, window_bounds = array<i64: 1, 80, 128>}]} {
    %c0_i32 = arith.constant 0 : i32
    %0 = arith.cmpi eq, %arg1, %c0_i32 : i32
    %c0_i32_0 = arith.constant 0 : i32
    %1 = arith.cmpi eq, %arg2, %c0_i32_0 : i32
    %2 = arith.andi %0, %1 : i1
    %3 = arith.extui %2 : i1 to i32
    %c0_i32_1 = arith.constant 0 : i32
    %4 = arith.cmpi ne, %3, %c0_i32_1 : i32
    scf.if %4 {
      %cst = arith.constant 0xFF800000 : f32
      %13 = vector.broadcast %cst : f32 to vector<64x1xf32>
      %c0_7 = arith.constant 0 : index
      %c0_8 = arith.constant 0 : index
      %14 = vector.load %arg11[%c0_7, %c0_8] : memref<64x1xf32, #tpu.memory_space<vmem>>, vector<64x1xf32>
      tpu.vector_store %arg11[%c0_7, %c0_8], %13 {strides = array<i32>} : memref<64x1xf32, #tpu.memory_space<vmem>>, vector<64x1xf32>,
    } else {
    }
    %c0 = arith.constant 0 : index
    %c0_2 = arith.constant 0 : index
    %c0_3 = arith.constant 0 : index
    %5 = vector.load %arg3[%c0, %c0_2, %c0_3] : memref<1x4x128xbf16, #tpu.memory_space<vmem>>, vector<1x4x128xbf16>
    %6 = vector.shape_cast %5 : vector<1x4x128xbf16> to vector<4x128xbf16>
    %c0_i32_4 = arith.constant 0 : i32
    %7 = arith.cmpi eq, %arg1, %c0_i32_4 : i32
    %8 = arith.extui %7 : i1 to i32
    %c0_i32_5 = arith.constant 0 : i32
    %9 = arith.cmpi ne, %8, %c0_i32_5 : i32
    scf.if %9 {
      %c0_7 = arith.constant 0 : index
      %c0_8 = arith.constant 0 : index
      %13 = vector.load %arg6[%c0_7, %c0_8] : memref<32x4xbf16, #tpu.memory_space<vmem>>, vector<32x4xbf16>
      %cst = arith.constant dense<0.000000e+00> : vector<32x128xf32>
      %14 = tpu.matmul %13, %6, %cst {dimension_numbers = #tpu.dot_dimension_numbers<[1], [0], [0], [1], [0, 0, 1, 1], [], []>} : vector<32x4xbf16>, vector<4x128xbf16>, vector<32x128xf32> -> vector<32x128xf32>
      %c0_9 = arith.constant 0 : index
      %c0_10 = arith.constant 0 : index
      %15 = vector.load %arg7[%c0_9, %c0_10] : memref<32x1xf32, #tpu.memory_space<vmem>>, vector<32x1xf32>
      %16 = vector.broadcast %15 : vector<32x1xf32> to vector<32x128xf32>
      %17 = arith.addf %14, %16 : vector<32x128xf32>
      %cst_11 = arith.constant 0.000000e+00 : f32
      %18 = vector.broadcast %cst_11 : f32 to vector<32x128xf32>
      %19 = arith.maximumf %17, %18 : vector<32x128xf32>
      %20 = arith.truncf %19 : vector<32x128xf32> to vector<32x128xbf16>
      %c0_12 = arith.constant 0 : index
      %c0_13 = arith.constant 0 : index
      %21 = vector.load %arg8[%c0_12, %c0_13] : memref<64x32xbf16, #tpu.memory_space<vmem>>, vector<64x32xbf16>
      %cst_14 = arith.constant dense<0.000000e+00> : vector<64x128xf32>
      %22 = tpu.matmul %21, %20, %cst_14 {dimension_numbers = #tpu.dot_dimension_numbers<[1], [0], [0], [1], [0, 0, 1, 1], [], []>} : vector<64x32xbf16>, vector<32x128xbf16>, vector<64x128xf32> -> vector<64x128xf32>
      %c0_15 = arith.constant 0 : index
      %c0_16 = arith.constant 0 : index
      %23 = vector.load %arg9[%c0_15, %c0_16] : memref<64x1xf32, #tpu.memory_space<vmem>>, vector<64x1xf32>
      %24 = vector.broadcast %23 : vector<64x1xf32> to vector<64x128xf32>
      %25 = arith.addf %22, %24 : vector<64x128xf32>
      %c0_17 = arith.constant 0 : index
      %c0_18 = arith.constant 0 : index
      %26 = vector.load %arg11[%c0_17, %c0_18] : memref<64x1xf32, #tpu.memory_space<vmem>>, vector<64x1xf32>
      %cst_19 = arith.constant dense<0xFF800000> : vector<64xf32>
      %27 = vector.multi_reduction <maximumf>, %25, %cst_19 [1] : vector<64x128xf32> to vector<64xf32>
      %28 = vector.shape_cast %27 : vector<64xf32> to vector<64x1xf32>
      %29 = arith.maximumf %26, %28 : vector<64x1xf32>
      %c0_20 = arith.constant 0 : index
      %c0_21 = arith.constant 0 : index
      %30 = vector.load %arg11[%c0_20, %c0_21] : memref<64x1xf32, #tpu.memory_space<vmem>>, vector<64x1xf32>
      tpu.vector_store %arg11[%c0_20, %c0_21], %29 {strides = array<i32>} : memref<64x1xf32, #tpu.memory_space<vmem>>, vector<64x1xf32>,
    } else {
    }
    %c1_i32 = arith.constant 1 : i32
    %10 = arith.cmpi eq, %arg1, %c1_i32 : i32
    %11 = arith.extui %10 : i1 to i32
    %c0_i32_6 = arith.constant 0 : i32
    %12 = arith.cmpi ne, %11, %c0_i32_6 : i32
    scf.if %12 {
      %c0_7 = arith.constant 0 : index
      %c0_8 = arith.constant 0 : index
      %13 = vector.load %arg4[%c0_7, %c0_8] : memref<16x4xbf16, #tpu.memory_space<vmem>>, vector<16x4xbf16>
      %cst = arith.constant dense<0.000000e+00> : vector<16x128xf32>
      %14 = tpu.matmul %13, %6, %cst {dimension_numbers = #tpu.dot_dimension_numbers<[1], [0], [0], [1], [0, 0, 1, 1], [], []>} : vector<16x4xbf16>, vector<4x128xbf16>, vector<16x128xf32> -> vector<16x128xf32>
      %c0_9 = arith.constant 0 : index
      %c0_10 = arith.constant 0 : index
      %15 = vector.load %arg5[%c0_9, %c0_10] : memref<16x1xf32, #tpu.memory_space<vmem>>, vector<16x1xf32>
      %16 = vector.broadcast %15 : vector<16x1xf32> to vector<16x128xf32>
      %17 = arith.addf %14, %16 : vector<16x128xf32>
      %c0_11 = arith.constant 0 : index
      %c0_12 = arith.constant 0 : index
      %18 = vector.load %arg11[%c0_11, %c0_12] : memref<64x1xf32, #tpu.memory_space<vmem>>, vector<64x1xf32>
      %19 = vector.shape_cast %18 : vector<64x1xf32> to vector<64x1xf32>
      %20 = vector.broadcast %19 : vector<64x1xf32> to vector<64x128xf32>
      %c0_13 = arith.constant 0 : index
      %c0_14 = arith.constant 0 : index
      %c0_15 = arith.constant 0 : index
      %21 = vector.load %arg10[%c0_13, %c0_14, %c0_15] : memref<1x80x128xf32, #tpu.memory_space<vmem>>, vector<1x64x128xf32>
      %22 = vector.shape_cast %21 : vector<1x64x128xf32> to vector<64x128xf32>
      %23 = vector.shape_cast %20 : vector<64x128xf32> to vector<1x64x128xf32>
      tpu.vector_store %arg10[%c0_13, %c0_14, %c0_15], %23 {strides = array<i32>} : memref<1x80x128xf32, #tpu.memory_space<vmem>>, vector<1x64x128xf32>,
      %c0_16 = arith.constant 0 : index
      %c64 = arith.constant 64 : index
      %c0_17 = arith.constant 0 : index
      %24 = vector.load %arg10[%c0_16, %c64, %c0_17] : memref<1x80x128xf32, #tpu.memory_space<vmem>>, vector<1x16x128xf32>
      %25 = vector.shape_cast %24 : vector<1x16x128xf32> to vector<16x128xf32>
      %26 = vector.shape_cast %17 : vector<16x128xf32> to vector<1x16x128xf32>
      tpu.vector_store %arg10[%c0_16, %c64, %c0_17], %26 {strides = array<i32>} : memref<1x80x128xf32, #tpu.memory_space<vmem>>, vector<1x16x128xf32>,
    } else {
    }
    return
  }
  func.func @transform_0(%arg0: i32, %arg1: i32, %arg2: i32) -> (i32, i32, i32) {
    %c0_i32 = arith.constant 0 : i32
    %c0_i32_0 = arith.constant 0 : i32
    return %arg0, %c0_i32, %arg2 : i32, i32, i32
  }
  func.func @transform_1(%arg0: i32, %arg1: i32, %arg2: i32) -> (i32, i32) {
    %c0_i32 = arith.constant 0 : i32
    %c0_i32_0 = arith.constant 0 : i32
    %c0_i32_1 = arith.constant 0 : i32
    return %c0_i32, %c0_i32_0 : i32, i32
  }
  func.func @transform_2(%arg0: i32, %arg1: i32, %arg2: i32) -> (i32, i32) {
    %c0_i32 = arith.constant 0 : i32
    %c0_i32_0 = arith.constant 0 : i32
    %c0_i32_1 = arith.constant 0 : i32
    return %c0_i32, %c0_i32_0 : i32, i32
  }
  func.func @transform_3(%arg0: i32, %arg1: i32, %arg2: i32) -> (i32, i32) {
    %c0_i32 = arith.constant 0 : i32
    %c0_i32_0 = arith.constant 0 : i32
    %c0_i32_1 = arith.constant 0 : i32
    return %c0_i32, %c0_i32_0 : i32, i32
  }
  func.func @transform_4(%arg0: i32, %arg1: i32, %arg2: i32) -> (i32, i32) {
    %c0_i32 = arith.constant 0 : i32
    %c0_i32_0 = arith.constant 0 : i32
    %c0_i32_1 = arith.constant 0 : i32
    return %c0_i32, %c0_i32_0 : i32, i32
  }
  func.func @transform_5(%arg0: i32, %arg1: i32, %arg2: i32) -> (i32, i32) {
    %c0_i32 = arith.constant 0 : i32
    %c0_i32_0 = arith.constant 0 : i32
    %c0_i32_1 = arith.constant 0 : i32
    return %c0_i32, %c0_i32_0 : i32, i32
  }
  func.func @transform_6(%arg0: i32, %arg1: i32, %arg2: i32) -> (i32, i32) {
    %c0_i32 = arith.constant 0 : i32
    %c0_i32_0 = arith.constant 0 : i32
    %c0_i32_1 = arith.constant 0 : i32
    return %c0_i32, %c0_i32_0 : i32, i32
  }
  func.func @transform_7(%arg0: i32, %arg1: i32, %arg2: i32) -> (i32, i32, i32) {
    %0 = arith.muli %arg2, %arg1 : i32
    %c0_i32 = arith.constant 0 : i32
    %c0_i32_0 = arith.constant 0 : i32
    return %arg0, %c0_i32, %0 : i32, i32, i32
  }
}

</mosaic_0001>

<bundles_post_ra>
// kernel: tpu_custom_call.1
= control target key start
LH: loop header
LB: loop body
LE: loop exit
PB: predicated region body
PF: predicated region fallthrough
CT: control target
= control target key end

     0   :  { %s1331_s0 = inlined_call_operand.vmem [shape: bf16[2,4,256], index: 0, kind: input, shape index: {}]   ;;  %s1332_s1 = inlined_call_operand.vmem [shape: bf16[16,4], index: 1, kind: input, shape index: {}]   ;;  %s1333_s2 = inlined_call_operand.vmem [shape: f32[16,1], index: 2, kind: input, shape index: {}]   ;;  %s1334_s3 = inlined_call_operand.vmem [shape: bf16[32,4], index: 3, kind: input, shape index: {}]   ;;  %s1335_s4 = inlined_call_operand.vmem [shape: f32[32,1], index: 4, kind: input, shape index: {}]   ;;  %s1336_s5 = inlined_call_operand.vmem [shape: bf16[64,32], index: 5, kind: input, shape index: {}]   ;;  %s1337_s6 = inlined_call_operand.vmem [shape: f32[64,1], index: 6, kind: input, shape index: {}]   ;;  %s1338_s7 = inlined_call_operand.hbm [shape: f32[2,80,256], index: 7, kind: output, shape index: {}]  }
   0x1   :  { %1344 = sst [smem:[#allocation10_spill]] %s1331_s0 }
   0x2   :  { %1345 = sst [smem:[#allocation11_spill]] %s1332_s1 }
   0x3   :  { %1346 = sst [smem:[#allocation12_spill]] %s1333_s2 }
   0x4   :  { %12 = vsyncpa [#allocation4], 0 }
   0x5   :  { %14 = vsyncpa [#allocation4 + $0x1], 0  ;;  %s1090_s24 = smov 0   ;;  %s1092_s25 = smov 0  }
   0x6   :  { %s1094_s26 = smov 0   ;;  %s1096_s27 = smov 0  }
   0x7   :  { %s1098_s28 = smov 0   ;;  %s1100_s29 = smov 0  }
   0x8   :  { %s1102_s30 = smov 0   ;;  %s1104_s8 = smov 0  }
   0x9   :  { %s1106_s9 = smov 0   ;;  %s1108_s10 = smov 0  }
   0xa LB: > { %1347 = sst [smem:[#allocation6_spill]] %s1038_s9  ;;  %s773_s11 = sadd.s32 4294967295, %s1042_s10   ;;  %s1042_s10 = sphi %s1108_s10, %s20_s10   ;;  %s1038_s9 = sphi %s1106_s9, %s1360_s9   ;;  %s1034_s8 = sphi %s1104_s8, %s1367_s8   ;;  %s1030_s30 = sphi %s1102_s30, %s1366_s30   ;;  %s1026_s29 = sphi %s1100_s29, %s1357_s29   ;;  %s1022_s28 = sphi %s1098_s28, %s1365_s28   ;;  %s1018_s27 = sphi %s1096_s27, %s1364_s27   ;;  %s1014_s26 = sphi %s1094_s26, %s1363_s26   ;;  %s1010_s25 = sphi %s1092_s25, %s1362_s25   ;;  %s1006_s24 = sphi %s1090_s24, %s1361_s24  }
   0xb   : > { %s774_s12 = sadd.s32 4294967294, %s1042_s10   ;;  %s32_s13 = sadd.s32 1, %s1030_s30 }
   0xc   : > { %p33_p0 = scmp.ge.s32.totalorder %s32_s13, 2  ;;  %s35_s14 = sadd.s32 1, %s1034_s8 }
   0xd   : > { %s39_s15 = sadd.s32 1, %s1038_s9  ;;  %s197_s16 = smul.u32 %s1030_s30, %s1034_s8 }
   0xe   : > { %s1369_s13 = smov (%p33_p0, %s32_s13), 0  ;;  %s1371_s14 = smov (!%p33_p0, %s35_s14), %s1034_s8 }
   0xf   : > { %1348 = sst [smem:[#allocation7_spill]] %s1369_s13  ;;  %p214_p1 = scmp.ne.s32.totalorder %s1014_s26, %s1010_s25 }
  0x10   : > { %p215_p2 = scmp.eq.s32.totalorder %s773_s11, 7  ;;  %p37_p3 = scmp.ge.s32.totalorder %s1371_s14, 2 }
  0x11   : > { %p220_p4 = scmp.ne.s32.totalorder %s1010_s25, %s1006_s24  ;;  %p221_p6 = scmp.eq.s32.totalorder %s774_s12, 7 }
  0x12   : > { %p1154_p5 = por %p215_p2, %p214_p1  ;;  %s1373_s14 = smov (%p37_p3, %s1371_s14), 0 }
  0x13   : > { %1350 = sst [smem:[#allocation8_spill]] %s1373_s14  ;;  %s1375_s15 = smov (!%p37_p3, %s39_s15), %s1038_s9 }
  0x14   : > { %s198_s18 = smul.u32 %s1373_s14, %s1369_s13  ;;  %p1163_p7 = por %p221_p6, %p220_p4 }
  0x15   : > { %p41_p8 = scmp.ge.s32.totalorder %s1375_s15, 2  ;;  %p777_p9 = scmp.ge.s32.totalorder %s1042_s10, 1 }
  0x16   : > { %s200_s20 = ssub.s32 %s197_s16, %s198_s18  ;;  %p268_p10 = scmp.lt.s32.totalorder %s1042_s10, 9 }
  0x17   : > { %s1377_s15 = smov (%p41_p8, %s1375_s15), 0  ;;  %s204_s23 = sadd.s32 1, %s1014_s26 }
  0x18   : > { %1352 = sst [smem:[#allocation9_spill]] %s1377_s15  ;;  %p269_p11 = pnand %p777_p9, %p268_p10 }
  0x19   : > { %s199_s21 = ssub.s32 %s1038_s9, %s1377_s15  ;;  %s1343_s12 = sand.u32 (!%p269_p11), 1, %s1010_s25  }
  0x1a   : > { %s201_s22 = sor.u32 %s200_s20, %s199_s21  ;;  %272 = sbr.rel (%p269_p11) target bundleno = 674 (0x2a2), region = 48 }
  0x1b   : > { %p202_p12 = scmp.eq.s32.totalorder %s201_s22, 0  ;;  %p303_p13 = scmp.lt.s32.totalorder (!%p269_p11), %s1026_s29, 1 }
  0x1c   : > { %s831_s16 = smul.u32 (!%p269_p11), 80, %s1343_s12  ;;  %p305_p0 = scmp.lt.s32.totalorder (!%p269_p11), %s1018_s27, 1 }
  0x1d   : > { %s1175_s11 = scalar_select %p202_p12, %s1014_s26, %s204_s23  }
  0x1e   : > { %p313_p1 = scmp.eq.s32.totalorder (!%p269_p11), %s1022_s28, 0  ;;  %p314_p2 = scmp.eq.s32.totalorder (!%p269_p11), %s1018_s27, 0 }
  0x1f   : > { %s304_s18 = scalar_select %p303_p13, %s1026_s29, 1 }
  0x20   : > { %s306_s20 = scalar_select %p305_p0, %s1018_s27, 1 }
  0x21   : > { %s778_s21 = sshll.u32 %s304_s18, 1  ;;  %p315_p3 = pnand %p314_p2, %p313_p1 }
  0x22   : > { %s308_s22 = sadd.s32 %s778_s21, %s306_s20  ;;  %s1353_s0 = sld [smem:[#allocation10_spill]] }
  0x23   : > { %s779_s23 = sshll.u32 %s308_s22, 1  ;;  %s1189_s9 = scalar_lea.vmem [#allocation3], %s831_s16 }
  0x24   : > { %318 = sbr.rel (%p315_p3) target bundleno = 50 (0x32), region = 52 }
  0x28   : > { %s310_s13 = scalar_lea.vmem %s1353_s0, %s779_s23 }
  0x29   : > { %vm319_vm0 = vcmask 7168   ;;  %v1044_v0 = vmov -inf  }
  0x2a   : > { %320 = vst.msk [vmem:[#allocation2] sm:$0xff] %vm319_vm0, %v1044_v0 }
  0x2b   : > { %321 = vst.msk [vmem:[#allocation2 + $0x8] sm:$0xff] %vm319_vm0, %v1044_v0 }
  0x2c   : > { %322 = vst.msk [vmem:[#allocation2 + $0x10] sm:$0xff] %vm319_vm0, %v1044_v0 }
  0x2d   : > { %323 = vst.msk [vmem:[#allocation2 + $0x18] sm:$0xff] %vm319_vm0, %v1044_v0 }
  0x2e   : > { %324 = vst.msk [vmem:[#allocation2 + $0x20] sm:$0xff] %vm319_vm0, %v1044_v0 }
  0x2f   : > { %325 = vst.msk [vmem:[#allocation2 + $0x28] sm:$0xff] %vm319_vm0, %v1044_v0 }
  0x30   : > { %326 = vst.msk [vmem:[#allocation2 + $0x30] sm:$0xff] %vm319_vm0, %v1044_v0 }
  0x31   : > { %327 = vst.msk [vmem:[#allocation2 + $0x38] sm:$0xff] %vm319_vm0, %v1044_v0 }
  0x32 PF: > { %v1191_v1 = vld [vmem:[%s310_s13] sm:$0x3]  ;;  %p780_p4 = scmp.ne.s32.totalorder %s1022_s28, 0 }
  0x34   : > { %331 = sbr.rel (%p780_p4) target bundleno = 503 (0x1f7), region = 56 }
  0x39   : > { %vm377_vm1 = vcmask 1041408   ;;  %v338_v2 = vld [vmem:[%s1335_s4 + $0x10] sm:$0xff]  ;;  %v336_v3 = vld [vmem:[%s1335_s4] sm:$0xff]  ;;  %v1045_v6 = vmov 0   ;;  %vm370_vm2 = vcmask 31744   ;;  %v339_v7 = vld [vmem:[%s1335_s4 + $0x18] sm:$0xff] }
  0x3a   : > { %v379_v4 = vsel %vm377_vm1, %v1191_v1, 0  ;;  %v820_v5 = vld [vmem:[%s1334_s3] sm:$0xff]  ;;  %926 = vset.pattern.permute.xlu0 %v1045_v6  ;;  %927 = vset.pattern.permute.xlu1 %v1045_v6  ;;  %v337_v8 = vld [vmem:[%s1335_s4 + $0x8] sm:$0xff]  ;;  %v416_v9 = vld [vmem:[%s1337_s6 + $0x10] sm:$0xff]  ;;  %vm482_vm3 = vcmask 261120   ;;  %vm556_vm4 = vcmask 7168  }
  0x3b   : > { %388 = vmatpush.bf16.msra.mxu0 %v379_v4  ;;  %352 = vperm.xlu0 %926, %v338_v2   ;;  %v417_v10 = vld [vmem:[%s1337_s6 + $0x18] sm:$0xff]  ;;  %v821_v11 = vld [vmem:[%s1334_s3 + $0x8] sm:$0xff]  ;;  %v420_v13 = vld [vmem:[%s1337_s6 + $0x30] sm:$0xff] }
  0x3c   : > { %342 = vperm.xlu1 %927, %v336_v3   ;;  %928 = vset.pattern.permute.xlu2 %v1045_v6  ;;  %v419_v12 = vld [vmem:[%s1337_s6 + $0x28] sm:$0xff]  ;;  %v414_v19 = vld [vmem:[%s1337_s6] sm:$0xff]  ;;  %v825_v36 = vld [vmem:[%s1336_s5 + $0x18] sm:$0xff] }
  0x3d   : > { %424 = vperm.xlu2 %928, %v414_v19   ;;  %v415_v31 = vld [vmem:[%s1337_s6 + $0x8] sm:$0xff]  ;;  %v822_v34 = vld [vmem:[%s1336_s5] sm:$0xff]  ;;  %v421_v38 = vld [vmem:[%s1337_s6 + $0x38] sm:$0xff] }
  0x3e   : > { %789 = vmatmul.msk.bf16.vlgmr.msra.gmra.mxu0 %vm370_vm2, %v820_v5  ;;  %v823_v35 = vld [vmem:[%s1336_s5 + $0x8] sm:$0xff]  ;;  %v418_v37 = vld [vmem:[%s1337_s6 + $0x20] sm:$0xff]  ;;  %v824_v39 = vld [vmem:[%s1336_s5 + $0x10] sm:$0xff] }
  0x3f   : > { %v524_v0 = vld [vmem:[#allocation2] sm:$0xff]  ;;  %v526_v4 = vld [vmem:[#allocation2 + $0x10] sm:$0xff]  ;;  %v525_v6 = vld [vmem:[#allocation2 + $0x8] sm:$0xff] }
  0x40   : > { %v529_v19 = vld [vmem:[#allocation2 + $0x28] sm:$0xff] }
  0x43   : > { %357 = vperm.xlu0 %926, %v339_v7  }
  0x44   : > { %347 = vperm.xlu1 %927, %v337_v8  }
  0x45   : > { %429 = vperm.xlu2 %928, %v415_v31  }
  0x4b   : > { %434 = vperm.xlu0 %926, %v416_v9  }
  0x4c   : > { %439 = vperm.xlu1 %927, %v417_v10   ;;  %v527_v10 = vld [vmem:[#allocation2 + $0x18] sm:$0xff] }
  0x4d   : > { %444 = vperm.xlu2 %928, %v418_v37  }
  0x4e   : > { %790 = vmatmul.msk.bf16.gmra.mxu0 %vm370_vm2, %v821_v11 }
  0x53   : > { %449 = vperm.xlu0 %926, %v419_v12  }
  0x54   : > { %454 = vperm.xlu1 %927, %v420_v13   ;;  %v530_v13 = vld [vmem:[#allocation2 + $0x30] sm:$0xff] }
  0x55   : > { %459 = vperm.xlu2 %928, %v421_v38  }
  0x97   : > { %v425_v40 = vpop.permute.xlu2 %424 }
  0x9f   : > { %v430_v46 = vpop.permute.xlu2 %429 }
  0xa7   : > { %v445_v53 = vpop.permute.xlu2 %444 }
  0xad   : > { %v353_v16 = vpop.permute.xlu0 %352 }
  0xae   : > { %v343_v17 = vpop.permute.xlu1 %342 }
  0xaf   : > { %v460_v60 = vpop.permute.xlu2 %459 }
  0xb5   : > { %v358_v20 = vpop.permute.xlu0 %357 }
  0xb6   : > { %v348_v22 = vpop.permute.xlu1 %347 }
  0xbb   : > { %v390_v14 = vpop.f32.mrf.mxu0 }
  0xbc   : > { %v391_v26 = vadd.f32 %v390_v14, %v343_v17  ;;  %v528_v14 = vld [vmem:[#allocation2 + $0x20] sm:$0xff] }
  0xbd   : > { %v435_v43 = vpop.permute.xlu0 %434 }
  0xbe   : > { %v400_v32 = vmax.f32 %v391_v26, 0.0  ;;  %v440_v49 = vpop.permute.xlu1 %439 }
  0xc3   : > { %v392_v15 = vpop.f32.mrf.mxu0 }
  0xc4   : > { %v393_v24 = vadd.f32 %v392_v15, %v348_v22 }
  0xc5   : > { %v450_v59 = vpop.permute.xlu0 %449 }
  0xc6   : > { %v401_v29 = vmax.f32 %v393_v24, 0.0  ;;  %v455_v54 = vpop.permute.xlu1 %454 }
  0xc8   : > { %v404_v33 = vpack.c.bf16 %v401_v29, %v400_v32 }
  0xcb   : > { %v395_v18 = vpop.f32.mrf.mxu0 }
  0xcc   : > { %v396_v21 = vadd.f32 %v395_v18, %v353_v16 }
  0xce   : > { %v402_v27 = vmax.f32 %v396_v21, 0.0 }
  0xd3   : > { %v397_v23 = vpop.f32.mrf.mxu0 }
  0xd4   : > { %v398_v25 = vadd.f32 %v397_v23, %v358_v20  ;;  %v531_v20 = vld [vmem:[#allocation2 + $0x38] sm:$0xff] }
  0xd6   : > { %v403_v28 = vmax.f32 %v398_v25, 0.0 }
  0xd8   : > { %v405_v30 = vpack.c.bf16 %v403_v28, %v402_v27 }
  0xda   : > { %501 = vmatpush.bf16.msra.mxu1 %v405_v30  ;;  %827 = vmatpush.bf16.msra.mxu2 %v405_v30 }
  0xdb   : > { %828 = vmatpush.bf16.msra.mxu3 %v405_v30 }
  0xde   : > { %502 = vmatpush.bf16.msra.mxu1 %v404_v33  ;;  %829 = vmatpush.bf16.msra.mxu2 %v404_v33 }
  0xdf   : > { %830 = vmatpush.bf16.msra.mxu3 %v404_v33 }
  0xe1   : > { %807 = vmatmul.msk.bf16.vlgmr.msra.gmra.mxu1 %vm482_vm3, %v822_v34  ;;  %808 = vmatmul.msk.bf16.vlgmr.msra.gmra.mxu2 %vm482_vm3, %v823_v35 }
  0xe2   : > { %810 = vmatmul.msk.bf16.vlgmr.msra.gmra.mxu3 %vm482_vm3, %v825_v36 }
  0xf1   : > { %809 = vmatmul.msk.bf16.gmra.mxu2 %vm482_vm3, %v824_v39 }
 0x15e   : > { %v504_v41 = vpop.f32.mrf.mxu1 }
 0x15f   : > { %v505_v42 = vadd.f32 %v504_v41, %v425_v40 }
 0x161   : > { %532 = vmax.xlane.f32.xlu0 %v505_v42 }
 0x164   : > { %v509_v44 = vpop.f32.mrf.mxu2 }
 0x165   : > { %v510_v45 = vadd.f32 %v509_v44, %v435_v43  ;;  %v519_v52 = vpop.f32.mrf.mxu3 }
 0x166   : > { %v506_v47 = vpop.f32.mrf.mxu1  ;;  %v520_v56 = vadd.f32 %v519_v52, %v455_v54 }
 0x167   : > { %v507_v48 = vadd.f32 %v506_v47, %v430_v46  ;;  %536 = vmax.xlane.f32.xlu2 %v510_v45 }
 0x169   : > { %534 = vmax.xlane.f32.xlu1 %v507_v48 }
 0x16c   : > { %v511_v50 = vpop.f32.mrf.mxu2 }
 0x16d   : > { %v512_v51 = vadd.f32 %v511_v50, %v440_v49  ;;  %v521_v58 = vpop.f32.mrf.mxu3 }
 0x16e   : > { %v522_v62 = vadd.f32 %v521_v58, %v460_v60 }
 0x16f   : > { %538 = vmax.xlane.f32.xlu2 %v512_v51 }
 0x174   : > { %v514_v55 = vpop.f32.mrf.mxu2 }
 0x175   : > { %v515_v57 = vadd.f32 %v514_v55, %v445_v53 }
 0x177   : > { %544 = vmax.xlane.f32.xlu2 %v520_v56  ;;  %540 = vmax.xlane.f32.xlu0 %v515_v57 }
 0x17c   : > { %v516_v61 = vpop.f32.mrf.mxu2 }
 0x17d   : > { %v517_v63 = vadd.f32 %v516_v61, %v450_v59 }
 0x17f   : > { %542 = vmax.xlane.f32.xlu1 %v517_v63  ;;  %546 = vmax.xlane.f32.xlu0 %v522_v62 }
 0x1d4   : > { %v533_v2 = vpop.xlane.xlu0 %532 }
 0x1d5   : > { %v548_v3 = vmax.f32 %v524_v0, %v533_v2 }
 0x1d7   : > { %557 = vst.msk [vmem:[#allocation2] sm:$0xff] %vm556_vm4, %v548_v3 }
 0x1da   : > { %v537_v5 = vpop.xlane.xlu2 %536 }
 0x1db   : > { %v550_v7 = vmax.f32 %v526_v4, %v537_v5 }
 0x1dc   : > { %v535_v8 = vpop.xlane.xlu1 %534 }
 0x1dd   : > { %559 = vst.msk [vmem:[#allocation2 + $0x10] sm:$0xff] %vm556_vm4, %v550_v7  ;;  %v549_v9 = vmax.f32 %v525_v6, %v535_v8 }
 0x1df   : > { %558 = vst.msk [vmem:[#allocation2 + $0x8] sm:$0xff] %vm556_vm4, %v549_v9 }
 0x1e2   : > { %v539_v11 = vpop.xlane.xlu2 %538 }
 0x1e3   : > { %v551_v12 = vmax.f32 %v527_v10, %v539_v11 }
 0x1e5   : > { %560 = vst.msk [vmem:[#allocation2 + $0x18] sm:$0xff] %vm556_vm4, %v551_v12 }
 0x1ea   : > { %v545_v15 = vpop.xlane.xlu2 %544  ;;  %v541_v16 = vpop.xlane.xlu0 %540 }
 0x1eb   : > { %v554_v17 = vmax.f32 %v530_v13, %v545_v15  ;;  %v552_v18 = vmax.f32 %v528_v14, %v541_v16 }
 0x1ed   : > { %563 = vst.msk [vmem:[#allocation2 + $0x30] sm:$0xff] %vm556_vm4, %v554_v17 }
 0x1ee   : > { %561 = vst.msk [vmem:[#allocation2 + $0x20] sm:$0xff] %vm556_vm4, %v552_v18 }
 0x1f2   : > { %v543_v21 = vpop.xlane.xlu1 %542  ;;  %v547_v22 = vpop.xlane.xlu0 %546 }
 0x1f3   : > { %v553_v23 = vmax.f32 %v529_v19, %v543_v21  ;;  %v555_v24 = vmax.f32 %v531_v20, %v547_v22 }
 0x1f5   : > { %562 = vst.msk [vmem:[#allocation2 + $0x28] sm:$0xff] %vm556_vm4, %v553_v23 }
 0x1f6   : > { %564 = vst.msk [vmem:[#allocation2 + $0x38] sm:$0xff] %vm556_vm4, %v555_v24 }
 0x1f7 PF: > { %p811_p6 = scmp.ne.s32.totalorder %s1022_s28, 1 }
 0x1f8   : > { %s1354_s2 = sld [smem:[#allocation12_spill]] (!%p811_p6) }
 0x1f9   : > { %568 = sbr.rel (%p811_p6) target bundleno = 653 (0x28d), region = 60  ;;  %s1355_s1 = sld [smem:[#allocation11_spill]] (!%p811_p6) }
 0x1fe   : > { %vm592_vm5 = vcmask 1041408   ;;  %v610_v25 = vld [vmem:[#allocation2] sm:$0xff]  ;;  %v1046_v27 = vmov 0   ;;  %v612_v30 = vld [vmem:[#allocation2 + $0x10] sm:$0xff]  ;;  %vm588_vm6 = vcmask 31744   ;;  %v611_v31 = vld [vmem:[#allocation2 + $0x8] sm:$0xff] }
 0x1ff   : > { %v571_v26 = vld [vmem:[%s1354_s2] sm:$0xff]  ;;  %930 = vset.pattern.permute.xlu1 %v1046_v27  ;;  %929 = vset.pattern.permute.xlu0 %v1046_v27  ;;  %v594_v28 = vsel %vm592_vm5, %v1191_v1, 0  ;;  %v572_v32 = vld [vmem:[%s1354_s2 + $0x8] sm:$0xff]  ;;  %v613_v1 = vld [vmem:[#allocation2 + $0x18] sm:$0xff] }
 0x200   : > { %v826_v29 = vld [vmem:[%s1355_s1] sm:$0xff]  ;;  %603 = vmatpush.bf16.msra.mxu0 %v594_v28  ;;  %620 = vperm.xlu1 %930, %v610_v25   ;;  %v615_v33 = vld [vmem:[#allocation2 + $0x28] sm:$0xff]  ;;  %v616_v35 = vld [vmem:[#allocation2 + $0x30] sm:$0xff] }
 0x201   : > { %575 = vperm.xlu0 %929, %v571_v26   ;;  %931 = vset.pattern.permute.xlu2 %v1046_v27  ;;  %v614_v34 = vld [vmem:[#allocation2 + $0x20] sm:$0xff]  ;;  %v617_v36 = vld [vmem:[#allocation2 + $0x38] sm:$0xff] }
 0x202   : > { %630 = vperm.xlu2 %931, %v612_v30  }
 0x203   : > { %816 = vmatmul.msk.bf16.vlgmr.msra.gmra.mxu0 %vm588_vm6, %v826_v29 }
 0x208   : > { %625 = vperm.xlu1 %930, %v611_v31  }
 0x209   : > { %580 = vperm.xlu0 %929, %v572_v32  }
 0x20a   : > { %635 = vperm.xlu2 %931, %v613_v1  }
 0x210   : > { %645 = vperm.xlu1 %930, %v615_v33  }
 0x211   : > { %640 = vperm.xlu0 %929, %v614_v34  }
 0x212   : > { %650 = vperm.xlu2 %931, %v616_v35  }
 0x219   : > { %655 = vperm.xlu0 %929, %v617_v36  }
 0x25c   : > { %v631_v37 = vpop.permute.xlu2 %630 }
 0x25d   : > { %660 = vst [vmem:[%s1189_s9 + $0x10] sm:$0xff] %v631_v37 }
 0x264   : > { %v636_v38 = vpop.permute.xlu2 %635 }
 0x265   : > { %661 = vst [vmem:[%s1189_s9 + $0x18] sm:$0xff] %v636_v38 }
 0x26c   : > { %v651_v39 = vpop.permute.xlu2 %650 }
 0x26d   : > { %664 = vst [vmem:[%s1189_s9 + $0x30] sm:$0xff] %v651_v39 }
 0x272   : > { %v621_v40 = vpop.permute.xlu1 %620 }
 0x273   : > { %658 = vst [vmem:[%s1189_s9] sm:$0xff] %v621_v40  ;;  %v576_v41 = vpop.permute.xlu0 %575 }
 0x27a   : > { %v626_v42 = vpop.permute.xlu1 %625 }
 0x27b   : > { %659 = vst [vmem:[%s1189_s9 + $0x8] sm:$0xff] %v626_v42  ;;  %v581_v43 = vpop.permute.xlu0 %580 }
 0x280   : > { %v605_v44 = vpop.f32.mrf.mxu0 }
 0x281   : > { %v606_v45 = vadd.f32 %v605_v44, %v576_v41 }
 0x282   : > { %v646_v46 = vpop.permute.xlu1 %645 }
 0x283   : > { %666 = vst [vmem:[%s1189_s9 + $0x40] sm:$0xff] %v606_v45  ;;  %v641_v47 = vpop.permute.xlu0 %640 }
 0x284   : > { %663 = vst [vmem:[%s1189_s9 + $0x28] sm:$0xff] %v646_v46 }
 0x285   : > { %662 = vst [vmem:[%s1189_s9 + $0x20] sm:$0xff] %v641_v47 }
 0x288   : > { %v607_v48 = vpop.f32.mrf.mxu0 }
 0x289   : > { %v608_v49 = vadd.f32 %v607_v48, %v581_v43 }
 0x28b   : > { %667 = vst [vmem:[%s1189_s9 + $0x48] sm:$0xff] %v608_v49  ;;  %v656_v50 = vpop.permute.xlu0 %655 }
 0x28c   : > { %665 = vst [vmem:[%s1189_s9 + $0x38] sm:$0xff] %v656_v50 }
 0x28d PF: > { %s676_s16 = smul.u32 %s1018_s27, %s1022_s28  ;;  %s683_s20 = sshll.u32 %s1189_s9, 4  ;;  %s684_s20 = int_to_ptr.vmem [resolvable:$true] %s683_s20 }
 0x28e   : > { %s832_s18 = smul.u32 20, %s1026_s29  ;;  %s1356_s15 = sand.u32 1, %s1010_s25  }
 0x28f   : > { %s669_s0 = scalar_lea.sflag [#allocation4], %s1356_s15  ;;  %s952_s29 = scalar_lea.hbm %s1338_s7, 320 }
 0x290   : > { %s680_s21 = sadd.s32 %s832_s18, %s676_s16 }
 0x291   : > { %s817_s13 = sshll.u32 %s680_s21, 3 }
 0x292   : > { %s682_s14 = scalar_lea.hbm %s1338_s7, %s817_s13 }
 0x293   : > { %s685_s12 = sshll.u32 %s682_s14, 4  ;;  %s686_s12 = int_to_ptr.hbm [resolvable:$true] %s685_s12 }
 0x294   : > { %s946_s1 = sshra.s32 %s686_s12, 4  ;;  %s947_s1 = int_to_ptr.hbm [resolvable:$true] %s946_s1 }
 0x295   : > { %s948_s2 = scalar_lea.hbm %s947_s1, 80  ;;  %p953_p11 = scmp.lt.s32.totalorder %s947_s1, %s1338_s7 }
 0x296   : > { %p949_p8 = scmp.ne.s32.totalorder %s947_s1, %s948_s2  ;;  %p954_p12 = scmp.lt.s32.totalorder %s952_s29, %s948_s2 }
 0x298   : > { %p950_p9 = pnand %p949_p8, %p1154_p5  ;;  %p955_p13 = por %p954_p12, %p953_p11 }
 0x29a   : > { %p951_p10 = pneg %p950_p9 }
 0x29c   : > { %p956_p0 = pnand %p955_p13, %p951_p10 }
 0x29e   : > { %959 = shalt.err (!%p956_p0)
}
 0x29f   : > { %s1047_s18 = smov 128   ;;  %s1048_s21 = smov 256  }
 0x2a0   : > { %s1049_s13 = smov 8  }
 0x2a1   : > { %833 = dma.vmem_to_hbm [thread:$0]  (%p1154_p5), %s684_s20, 1280, %s686_s12, %s669_s0, %s1047_s18, %s1048_s21, %s1049_s13  }
 0x2a2 PF: > { %p839_p1 = scmp.ge.s32.totalorder %s1042_s10, 2  ;;  %s700_s22 = sand.u32 1, %s1006_s24  }
 0x2a3   : > { %s701_s1 = scalar_lea.sflag [#allocation4], %s700_s22 }
 0x2a4   : > { %p836_p2 = pnand %p839_p1, %p1163_p7 }
 0x2a6   : > { %p837_p3 = pneg %p836_p2 }
 0x2a8   : > { %1001 = dma.done.wait (%p837_p3), %s701_s1, 1280  }
 0x2a9   : > { %1003 = vsyncadd (%p837_p3), %s701_s1, 4294966016  ;;  %s20_s10 = sadd.s32 1, %s1042_s10   ;;  %s1357_s29 = sld [smem:[#allocation6_spill]] }
 0x2aa   : > { %p17_p4 = scmp.ge.s32.totalorder %s20_s10, 10   ;;  %s1358_s0 = sld [smem:[#allocation7_spill]] }
 0x2ab   : > { %s1359_s2 = sld [smem:[#allocation8_spill]]  ;;  %s1361_s24 = smov %s1010_s25 }
 0x2ac   : > { %s1360_s9 = sld [smem:[#allocation9_spill]]  ;;  %s1362_s25 = smov %s1014_s26 }
 0x2ad   : > { %s1363_s26 = smov %s1175_s11  ;;  %s1364_s27 = smov %s1030_s30 }
 0x2ae   : > { %s1365_s28 = smov %s1034_s8  ;;  %19 = sbr.rel (!%p17_p4) target bundleno = 10 (0xa), region = 95 }
 0x2b0   : > { %s1366_s30 = smov %s1358_s0 }
 0x2b1   : > { %s1367_s8 = smov %s1359_s2 }
 0x2b3   :  { %707 = vsyncpa [#allocation4], 1 }
 0x2b4   :  { %709 = vsyncpa [#allocation4 + $0x1], 1 }

</bundles_post_ra>
